<compile_context>
chip_gen: v6e
topology: v6e:2x2x1
jax: 0.10.0
libtpu: 0.0.40
codegen_flags: <defaults>
</compile_context>

<pallas_src>
import functools

import jax
import jax.numpy as jnp
import numpy as np
from jax.experimental import pallas as pl
from jax.experimental.pallas import tpu as pltpu


def _round_up(x, m):
    return (x + m - 1) // m * m


# ---------------------------------------------------------------------------
# Fused kernel: upconv (transpose, kernel==stride==s) + concat + conv stack
# + BatchNorm (training-mode) + ReLU, all on lane-dense (C, N*L) slabs.
# ---------------------------------------------------------------------------
def fused_decoder_kernel(*refs, s, K, L, no_layers, has_skip, use_norm, eps):
    it = iter(refs)
    x_ref = next(it)                   # (Cup, M)   upconv input, lane-expanded (col j -> j // s)
    wt_ref = next(it)                  # (s, C1p, Cup)  wt_ref[k][:Cup] = W[:, :, k].T, rest 0
    bt_ref = next(it)                  # (C1p, 1)
    y_ref = next(it) if has_skip else None   # (C1p, M)  skip rows pre-placed at [Cup:Cup+Cskip]
    wb = [(next(it), next(it)) for _ in range(no_layers)]   # (Cout, K*Cin_i), (Cout, 1)
    gamma_ref = next(it)               # (Cout, 1)
    beta_ref = next(it)                # (Cout, 1)
    o_ref = next(it)                   # (Cout, M)

    M = x_ref.shape[1]
    lane = jax.lax.broadcasted_iota(jnp.int32, (1, M), 1)

    # ---- ConvTranspose1d (kernel == stride == s); t*s+k interleave via lane phase ----
    phase = lane % s
    xr = x_ref[...].astype(jnp.float32)
    up = jnp.zeros((wt_ref.shape[1], M), jnp.float32)
    for k in range(s):                               # s tiny, fully unrolled
        uk = jnp.dot(wt_ref[k], xr, preferred_element_type=jnp.float32)
        up = up + jnp.where(phase == k, uk, 0.0)
    h = up + bt_ref[...]                             # bias broadcast once (hoisted)
    if has_skip:
        # channel concat == elementwise add of row-pre-placed skip slab (no sublane concat)
        h = h + y_ref[...].astype(jnp.float32)

    # ---- conv stack: shifted views (roll + per-sample boundary mask) -> im2col dot ----
    pad = K // 2
    pos = lane % L                                   # position within each sample (hoisted)
    valid = {d: jnp.logical_and(pos + d >= 0, pos + d < L)
             for d in range(-pad, pad + 1) if d != 0}

    for i in range(no_layers):
        w_ref, b_ref = wb[i]
        cin = h.shape[0]
        cols = []
        for k in range(K):
            d = k - pad
            if d == 0:
                cols.append(h)
            else:
                shifted = pltpu.roll(h, shift=(-d) % M, axis=1)   # XLU slot
                cols.append(jnp.where(valid[d], shifted, 0.0))    # zero 'same' padding
        w_flat = w_ref[...]
        if cin % 8 == 0:
            # single MXU dot per layer over the full im2col slab
            im2col = jnp.concatenate(cols, axis=0)                # (K*cin, M), tile-aligned
            acc = jnp.dot(w_flat, im2col, preferred_element_type=jnp.float32)
        else:
            acc = jnp.zeros((w_flat.shape[0], M), jnp.float32)
            for k in range(K):
                acc = acc + jnp.dot(w_flat[:, k * cin:(k + 1) * cin], cols[k],
                                    preferred_element_type=jnp.float32)
        acc = acc + b_ref[...]
        if use_norm and i == no_layers - 1:
            # BatchNorm1d, training mode: biased stats over (batch, length) == lane axis.
            mean = jnp.mean(acc, axis=1, keepdims=True)
            dcc = acc - mean
            var = jnp.mean(dcc * dcc, axis=1, keepdims=True)
            acc = gamma_ref[...] * dcc * jax.lax.rsqrt(var + eps) + beta_ref[...]
            # TODO(synk): running_mean / running_var buffer updates are not modeled.
        h = jnp.maximum(acc, 0.0)                    # activation_func = ReLU
    o_ref[...] = h.astype(o_ref.dtype)


# ---------------------------------------------------------------------------
# Wrapper: layout glue (lane-dense slabs, zero-padded channel placement) + call.
# ---------------------------------------------------------------------------
def decoder_block_forward(params, x, cat_features=False, y=None, *, use_norm=True, eps=1e-5):
    N, Cup, Lin = x.shape
    wt, bt = params["wt"], params["bt"]
    s = wt.shape[2]
    L = Lin * s
    M = N * L
    conv_ws, conv_bs = params["conv_w"], params["conv_b"]
    no_layers = len(conv_ws)
    Cout = conv_ws[-1].shape[0]
    K = conv_ws[0].shape[2]
    Cskip = y.shape[1] if cat_features else 0
    C1 = Cup + Cskip
    C1p = _round_up(C1, 8)          # pad layer-1 channels to a sublane multiple

    f32 = jnp.float32
    # lane-dense slabs: channels on sublanes, (batch * length) on lanes (pure layout glue)
    x_slab = jnp.transpose(x, (1, 0, 2)).reshape(Cup, N * Lin)
    x_rep = jnp.repeat(x_slab, s, axis=1)                       # col j -> x_slab[:, j // s]
    wt_t = jnp.transpose(wt, (2, 1, 0))                         # (s, Cout_up, Cin_up)
    wt_aug = jnp.zeros((s, C1p, Cup), f32).at[:, :Cup, :].set(wt_t)
    bt_aug = jnp.zeros((C1p, 1), f32).at[:Cup, 0].set(bt)
    args = [x_rep, wt_aug, bt_aug]
    if cat_features:
        y_slab = jnp.transpose(y, (1, 0, 2)).reshape(Cskip, M)
        args.append(jnp.zeros((C1p, M), f32).at[Cup:C1, :].set(y_slab))

    flops = 2 * s * C1p * Cup * M
    for i, (w, b) in enumerate(zip(conv_ws, conv_bs)):
        co, ci, kk = w.shape
        cip = C1p if i == 0 else ci
        wp = jnp.zeros((co, cip, kk), f32).at[:, :ci, :].set(w)
        args.append(jnp.transpose(wp, (0, 2, 1)).reshape(co, kk * cip))   # (Cout, K*Cin)
        args.append(b.reshape(-1, 1))
        flops += 2 * co * kk * cip * M
    args.append(params["gamma"].reshape(-1, 1))
    args.append(params["beta"].reshape(-1, 1))

    bytes_accessed = 4 * (sum(int(np.prod(a.shape)) for a in args) + Cout * M)
    o_slab = pl.pallas_call(
        functools.partial(
            fused_decoder_kernel,
            s=s, K=K, L=L, no_layers=no_layers,
            has_skip=cat_features, use_norm=use_norm, eps=eps,
        ),
        out_shape=jax.ShapeDtypeStruct((Cout, M), x.dtype),
        in_specs=[pl.BlockSpec(memory_space=pltpu.MemorySpace.VMEM)] * len(args),
        out_specs=pl.BlockSpec(memory_space=pltpu.MemorySpace.VMEM),
        cost_estimate=pl.CostEstimate(flops=int(flops), transcendentals=int(Cout),
                                      bytes_accessed=int(bytes_accessed)),
    )(*args)
    # back to PyTorch (N, C, L) layout — wrapper-side plumbing
    return jnp.transpose(o_slab.reshape(Cout, N, L), (1, 0, 2))


# ---------------------------------------------------------------------------
# Pure-JAX reference (same semantics) for a correctness check.
# ---------------------------------------------------------------------------
def reference_forward(params, x, y, *, use_norm=True, eps=1e-5):
    hi = jax.lax.Precision.HIGHEST
    N, C, Lin = x.shape
    Wt, bt = params["wt"], params["bt"]
    s = Wt.shape[2]
    tmp = jnp.einsum("nct,cok->nokt", x, Wt, precision=hi)      # (N, Cout, s, Lin)
    up = jnp.transpose(tmp, (0, 1, 3, 2)).reshape(N, C, Lin * s) + bt[None, :, None]
    h = jnp.concatenate([up, y], axis=1)
    no_layers = len(params["conv_w"])
    for i in range(no_layers):
        W, b = params["conv_w"][i], params["conv_b"][i]
        K = W.shape[2]
        pad = K // 2
        L = h.shape[2]
        hp = jnp.pad(h, ((0, 0), (0, 0), (pad, pad)))
        out = jnp.zeros((N, W.shape[0], L)) + b[None, :, None]
        for k in range(K):
            out = out + jnp.einsum("oc,ncl->nol", W[:, :, k], hp[:, :, k:k + L],
                                   precision=hi)
        if use_norm and i == no_layers - 1:
            mean = jnp.mean(out, axis=(0, 2), keepdims=True)
            var = jnp.mean((out - mean) ** 2, axis=(0, 2), keepdims=True)
            out = (params["gamma"][None, :, None] * (out - mean)
                   * jax.lax.rsqrt(var + eps) + params["beta"][None, :, None])
        h = jnp.maximum(out, 0.0)
    return h


if __name__ == "__main__":
    # Static configuration (see header). N=4 so that N * L_up = 128 lanes (lane-dense).
    N, Cup, Lin = 4, 4, 16
    upconv_stride = 2
    Cskip = 4
    conv_input_channels = Cup + Cskip      # 8 (after concat)
    output_channels = 8
    kernel_size = 3
    no_layers = 2
    L_up = Lin * upconv_stride

    key = jax.random.PRNGKey(0)
    keys = jax.random.split(key, 10)

    # Deterministic parameter init (synthetic — no checkpoint load).
    params = {
        "wt": jax.random.normal(keys[0], (Cup, Cup, upconv_stride), jnp.float32)
              / np.sqrt(Cup * upconv_stride),
        "bt": 0.1 * jax.random.normal(keys[1], (Cup,), jnp.float32),
        "conv_w": [
            jax.random.normal(keys[2], (output_channels, conv_input_channels, kernel_size),
                              jnp.float32) / np.sqrt(conv_input_channels * kernel_size),
            jax.random.normal(keys[3], (output_channels, output_channels, kernel_size),
                              jnp.float32) / np.sqrt(output_channels * kernel_size),
        ],
        "conv_b": [
            0.1 * jax.random.normal(keys[4], (output_channels,), jnp.float32),
            0.1 * jax.random.normal(keys[5], (output_channels,), jnp.float32),
        ],
        "gamma": 1.0 + 0.1 * jax.random.normal(keys[6], (output_channels,), jnp.float32),
        "beta": 0.1 * jax.random.normal(keys[7], (output_channels,), jnp.float32),
    }

    x = jax.random.normal(keys[8], (N, Cup, Lin), jnp.float32)
    y_skip = jax.random.normal(keys[9], (N, Cskip, L_up), jnp.float32)

    out = decoder_block_forward(params, x, cat_features=True, y=y_skip, use_norm=True)
    out = jax.block_until_ready(out)
    assert out.shape == (N, output_channels, L_up)

    ref = jax.block_until_ready(reference_forward(params, x, y_skip, use_norm=True))
    np.testing.assert_allclose(np.asarray(out), np.asarray(ref), rtol=2e-3, atol=2e-3)

    print("KERNEL_OK")
</pallas_src>

<mosaic_0001>
module attributes {stable_mosaic.version = 11 : i64} {
  func.func @fused_decoder_kernel(%arg0: memref<4x128xf32, #tpu.memory_space<vmem>>, %arg1: memref<2x8x4xf32, #tpu.memory_space<vmem>>, %arg2: memref<8x1xf32, #tpu.memory_space<vmem>>, %arg3: memref<8x128xf32, #tpu.memory_space<vmem>>, %arg4: memref<8x24xf32, #tpu.memory_space<vmem>>, %arg5: memref<8x1xf32, #tpu.memory_space<vmem>>, %arg6: memref<8x24xf32, #tpu.memory_space<vmem>>, %arg7: memref<8x1xf32, #tpu.memory_space<vmem>>, %arg8: memref<8x1xf32, #tpu.memory_space<vmem>>, %arg9: memref<8x1xf32, #tpu.memory_space<vmem>>, %arg10: memref<8x128xf32, #tpu.memory_space<vmem>>) attributes {dimension_semantics = [], scalar_prefetch = 0 : i64, scratch_operands = 0 : i64, tpu.core_type = #tpu.core_type<tc>} {
    %0 = tpu.iota {dimensions = array<i32: 1>} : vector<1x128xi32>
    %c2_i32 = arith.constant 2 : i32
    %c0_i32 = arith.constant 0 : i32
    %1 = arith.cmpi eq, %c2_i32, %c0_i32 : i32
    %c1_i32 = arith.constant 1 : i32
    %2 = arith.select %1, %c1_i32, %c2_i32 : i32
    %3 = vector.broadcast %2 : i32 to vector<1x128xi32>
    %4 = arith.remsi %0, %3 : vector<1x128xi32>
    %c0_i32_0 = arith.constant 0 : i32
    %5 = vector.broadcast %c0_i32_0 : i32 to vector<1x128xi32>
    %6 = arith.cmpi ne, %4, %5 : vector<1x128xi32>
    %c0_i32_1 = arith.constant 0 : i32
    %7 = vector.broadcast %c0_i32_1 : i32 to vector<1x128xi32>
    %8 = arith.cmpi slt, %4, %7 : vector<1x128xi32>
    %c0_i32_2 = arith.constant 0 : i32
    %9 = arith.cmpi slt, %2, %c0_i32_2 : i32
    %10 = vector.broadcast %9 : i1 to vector<1x128xi1>
    %11 = vector.broadcast %10 : vector<1x128xi1> to vector<1x128xi1>
    %12 = arith.xori %8, %11 : vector<1x128xi1>
    %13 = arith.andi %12, %6 : vector<1x128xi1>
    %14 = vector.broadcast %2 : i32 to vector<1x128xi32>
    %15 = arith.addi %4, %14 : vector<1x128xi32>
    %16 = arith.select %13, %15, %4 : vector<1x128xi1>, vector<1x128xi32>
    %c0 = arith.constant 0 : index
    %c0_3 = arith.constant 0 : index
    %17 = vector.load %arg0[%c0, %c0_3] : memref<4x128xf32, #tpu.memory_space<vmem>>, vector<4x128xf32>
    %cst = arith.constant 0.000000e+00 : f32
    %18 = vector.broadcast %cst : f32 to vector<8x128xf32>
    %c0_4 = arith.constant 0 : index
    %c0_5 = arith.constant 0 : index
    %c0_6 = arith.constant 0 : index
    %19 = vector.load %arg1[%c0_4, %c0_5, %c0_6] : memref<2x8x4xf32, #tpu.memory_space<vmem>>, vector<1x8x4xf32>
    %20 = vector.shape_cast %19 : vector<1x8x4xf32> to vector<8x4xf32>
    %cst_7 = arith.constant dense<0.000000e+00> : vector<8x128xf32>
    %21 = tpu.matmul %20, %17, %cst_7 {dimension_numbers = #tpu.dot_dimension_numbers<[1], [0], [0], [1], [0, 0, 1, 1], [], []>} : vector<8x4xf32>, vector<4x128xf32>, vector<8x128xf32> -> vector<8x128xf32>
    %c0_i32_8 = arith.constant 0 : i32
    %22 = vector.broadcast %c0_i32_8 : i32 to vector<1x128xi32>
    %23 = arith.cmpi eq, %16, %22 : vector<1x128xi32>
    %cst_9 = arith.constant 0.000000e+00 : f32
    %24 = vector.shape_cast %23 : vector<1x128xi1> to vector<1x128xi1>
    %25 = vector.broadcast %24 : vector<1x128xi1> to vector<8x128xi1>
    %26 = vector.broadcast %cst_9 : f32 to vector<8x128xf32>
    %27 = arith.select %25, %21, %26 : vector<8x128xi1>, vector<8x128xf32>
    %28 = arith.addf %18, %27 : vector<8x128xf32>
    %c1 = arith.constant 1 : index
    %c0_10 = arith.constant 0 : index
    %c0_11 = arith.constant 0 : index
    %29 = vector.load %arg1[%c1, %c0_10, %c0_11] : memref<2x8x4xf32, #tpu.memory_space<vmem>>, vector<1x8x4xf32>
    %30 = vector.shape_cast %29 : vector<1x8x4xf32> to vector<8x4xf32>
    %cst_12 = arith.constant dense<0.000000e+00> : vector<8x128xf32>
    %31 = tpu.matmul %30, %17, %cst_12 {dimension_numbers = #tpu.dot_dimension_numbers<[1], [0], [0], [1], [0, 0, 1, 1], [], []>} : vector<8x4xf32>, vector<4x128xf32>, vector<8x128xf32> -> vector<8x128xf32>
    %c1_i32_13 = arith.constant 1 : i32
    %32 = vector.broadcast %c1_i32_13 : i32 to vector<1x128xi32>
    %33 = arith.cmpi eq, %16, %32 : vector<1x128xi32>
    %cst_14 = arith.constant 0.000000e+00 : f32
    %34 = vector.shape_cast %33 : vector<1x128xi1> to vector<1x128xi1>
    %35 = vector.broadcast %34 : vector<1x128xi1> to vector<8x128xi1>
    %36 = vector.broadcast %cst_14 : f32 to vector<8x128xf32>
    %37 = arith.select %35, %31, %36 : vector<8x128xi1>, vector<8x128xf32>
    %38 = arith.addf %28, %37 : vector<8x128xf32>
    %c0_15 = arith.constant 0 : index
    %c0_16 = arith.constant 0 : index
    %39 = vector.load %arg2[%c0_15, %c0_16] : memref<8x1xf32, #tpu.memory_space<vmem>>, vector<8x1xf32>
    %40 = vector.broadcast %39 : vector<8x1xf32> to vector<8x128xf32>
    %41 = arith.addf %38, %40 : vector<8x128xf32>
    %c0_17 = arith.constant 0 : index
    %c0_18 = arith.constant 0 : index
    %42 = vector.load %arg3[%c0_17, %c0_18] : memref<8x128xf32, #tpu.memory_space<vmem>>, vector<8x128xf32>
    %43 = arith.addf %41, %42 : vector<8x128xf32>
    %c32_i32 = arith.constant 32 : i32
    %c0_i32_19 = arith.constant 0 : i32
    %44 = arith.cmpi eq, %c32_i32, %c0_i32_19 : i32
    %c1_i32_20 = arith.constant 1 : i32
    %45 = arith.select %44, %c1_i32_20, %c32_i32 : i32
    %46 = vector.broadcast %45 : i32 to vector<1x128xi32>
    %47 = arith.remsi %0, %46 : vector<1x128xi32>
    %c0_i32_21 = arith.constant 0 : i32
    %48 = vector.broadcast %c0_i32_21 : i32 to vector<1x128xi32>
    %49 = arith.cmpi ne, %47, %48 : vector<1x128xi32>
    %c0_i32_22 = arith.constant 0 : i32
    %50 = vector.broadcast %c0_i32_22 : i32 to vector<1x128xi32>
    %51 = arith.cmpi slt, %47, %50 : vector<1x128xi32>
    %c0_i32_23 = arith.constant 0 : i32
    %52 = arith.cmpi slt, %45, %c0_i32_23 : i32
    %53 = vector.broadcast %52 : i1 to vector<1x128xi1>
    %54 = vector.broadcast %53 : vector<1x128xi1> to vector<1x128xi1>
    %55 = arith.xori %51, %54 : vector<1x128xi1>
    %56 = arith.andi %55, %49 : vector<1x128xi1>
    %57 = vector.broadcast %45 : i32 to vector<1x128xi32>
    %58 = arith.addi %47, %57 : vector<1x128xi32>
    %59 = arith.select %56, %58, %47 : vector<1x128xi1>, vector<1x128xi32>
    %c-1_i32 = arith.constant -1 : i32
    %60 = vector.broadcast %c-1_i32 : i32 to vector<1x128xi32>
    %61 = arith.addi %59, %60 : vector<1x128xi32>
    %c0_i32_24 = arith.constant 0 : i32
    %62 = vector.broadcast %c0_i32_24 : i32 to vector<1x128xi32>
    %63 = arith.cmpi sge, %61, %62 : vector<1x128xi32>
    %c-1_i32_25 = arith.constant -1 : i32
    %64 = vector.broadcast %c-1_i32_25 : i32 to vector<1x128xi32>
    %65 = arith.addi %59, %64 : vector<1x128xi32>
    %c32_i32_26 = arith.constant 32 : i32
    %66 = vector.broadcast %c32_i32_26 : i32 to vector<1x128xi32>
    %67 = arith.cmpi slt, %65, %66 : vector<1x128xi32>
    %68 = arith.andi %63, %67 : vector<1x128xi1>
    %c1_i32_27 = arith.constant 1 : i32
    %69 = vector.broadcast %c1_i32_27 : i32 to vector<1x128xi32>
    %70 = arith.addi %59, %69 : vector<1x128xi32>
    %c0_i32_28 = arith.constant 0 : i32
    %71 = vector.broadcast %c0_i32_28 : i32 to vector<1x128xi32>
    %72 = arith.cmpi sge, %70, %71 : vector<1x128xi32>
    %c1_i32_29 = arith.constant 1 : i32
    %73 = vector.broadcast %c1_i32_29 : i32 to vector<1x128xi32>
    %74 = arith.addi %59, %73 : vector<1x128xi32>
    %c32_i32_30 = arith.constant 32 : i32
    %75 = vector.broadcast %c32_i32_30 : i32 to vector<1x128xi32>
    %76 = arith.cmpi slt, %74, %75 : vector<1x128xi32>
    %77 = arith.andi %72, %76 : vector<1x128xi1>
    %c1_i32_31 = arith.constant 1 : i32
    %78 = tpu.dynamic_rotate %43 by %c1_i32_31 dim 1 : vector<8x128xf32>, i32 -> vector<8x128xf32>
    %cst_32 = arith.constant 0.000000e+00 : f32
    %79 = vector.shape_cast %68 : vector<1x128xi1> to vector<1x128xi1>
    %80 = vector.broadcast %79 : vector<1x128xi1> to vector<8x128xi1>
    %81 = vector.broadcast %cst_32 : f32 to vector<8x128xf32>
    %82 = arith.select %80, %78, %81 : vector<8x128xi1>, vector<8x128xf32>
    %c127_i32 = arith.constant 127 : i32
    %83 = tpu.dynamic_rotate %43 by %c127_i32 dim 1 : vector<8x128xf32>, i32 -> vector<8x128xf32>
    %cst_33 = arith.constant 0.000000e+00 : f32
    %84 = vector.shape_cast %77 : vector<1x128xi1> to vector<1x128xi1>
    %85 = vector.broadcast %84 : vector<1x128xi1> to vector<8x128xi1>
    %86 = vector.broadcast %cst_33 : f32 to vector<8x128xf32>
    %87 = arith.select %85, %83, %86 : vector<8x128xi1>, vector<8x128xf32>
    %c0_34 = arith.constant 0 : index
    %c0_35 = arith.constant 0 : index
    %88 = vector.load %arg4[%c0_34, %c0_35] : memref<8x24xf32, #tpu.memory_space<vmem>>, vector<8x24xf32>
    %89 = tpu.concatenate %82, %43, %87 in 0 : vector<8x128xf32>, vector<8x128xf32>, vector<8x128xf32> -> vector<24x128xf32>
    %cst_36 = arith.constant dense<0.000000e+00> : vector<8x128xf32>
    %90 = tpu.matmul %88, %89, %cst_36 {dimension_numbers = #tpu.dot_dimension_numbers<[1], [0], [0], [1], [0, 0, 1, 1], [], []>} : vector<8x24xf32>, vector<24x128xf32>, vector<8x128xf32> -> vector<8x128xf32>
    %c0_37 = arith.constant 0 : index
    %c0_38 = arith.constant 0 : index
    %91 = vector.load %arg5[%c0_37, %c0_38] : memref<8x1xf32, #tpu.memory_space<vmem>>, vector<8x1xf32>
    %92 = vector.broadcast %91 : vector<8x1xf32> to vector<8x128xf32>
    %93 = arith.addf %90, %92 : vector<8x128xf32>
    %cst_39 = arith.constant 0.000000e+00 : f32
    %94 = vector.broadcast %cst_39 : f32 to vector<8x128xf32>
    %95 = arith.maximumf %93, %94 : vector<8x128xf32>
    %c1_i32_40 = arith.constant 1 : i32
    %96 = tpu.dynamic_rotate %95 by %c1_i32_40 dim 1 : vector<8x128xf32>, i32 -> vector<8x128xf32>
    %cst_41 = arith.constant 0.000000e+00 : f32
    %97 = vector.shape_cast %68 : vector<1x128xi1> to vector<1x128xi1>
    %98 = vector.broadcast %97 : vector<1x128xi1> to vector<8x128xi1>
    %99 = vector.broadcast %cst_41 : f32 to vector<8x128xf32>
    %100 = arith.select %98, %96, %99 : vector<8x128xi1>, vector<8x128xf32>
    %c127_i32_42 = arith.constant 127 : i32
    %101 = tpu.dynamic_rotate %95 by %c127_i32_42 dim 1 : vector<8x128xf32>, i32 -> vector<8x128xf32>
    %cst_43 = arith.constant 0.000000e+00 : f32
    %102 = vector.shape_cast %77 : vector<1x128xi1> to vector<1x128xi1>
    %103 = vector.broadcast %102 : vector<1x128xi1> to vector<8x128xi1>
    %104 = vector.broadcast %cst_43 : f32 to vector<8x128xf32>
    %105 = arith.select %103, %101, %104 : vector<8x128xi1>, vector<8x128xf32>
    %c0_44 = arith.constant 0 : index
    %c0_45 = arith.constant 0 : index
    %106 = vector.load %arg6[%c0_44, %c0_45] : memref<8x24xf32, #tpu.memory_space<vmem>>, vector<8x24xf32>
    %107 = tpu.concatenate %100, %95, %105 in 0 : vector<8x128xf32>, vector<8x128xf32>, vector<8x128xf32> -> vector<24x128xf32>
    %cst_46 = arith.constant dense<0.000000e+00> : vector<8x128xf32>
    %108 = tpu.matmul %106, %107, %cst_46 {dimension_numbers = #tpu.dot_dimension_numbers<[1], [0], [0], [1], [0, 0, 1, 1], [], []>} : vector<8x24xf32>, vector<24x128xf32>, vector<8x128xf32> -> vector<8x128xf32>
    %c0_47 = arith.constant 0 : index
    %c0_48 = arith.constant 0 : index
    %109 = vector.load %arg7[%c0_47, %c0_48] : memref<8x1xf32, #tpu.memory_space<vmem>>, vector<8x1xf32>
    %110 = vector.broadcast %109 : vector<8x1xf32> to vector<8x128xf32>
    %111 = arith.addf %108, %110 : vector<8x128xf32>
    %cst_49 = arith.constant dense<0.000000e+00> : vector<8xf32>
    %112 = vector.multi_reduction <add>, %111, %cst_49 [1] : vector<8x128xf32> to vector<8xf32>
    %113 = vector.shape_cast %112 : vector<8xf32> to vector<8x1xf32>
    %cst_50 = arith.constant 1.280000e+02 : f32
    %114 = vector.broadcast %cst_50 : f32 to vector<8x1xf32>
    %115 = arith.divf %113, %114 : vector<8x1xf32>
    %116 = vector.broadcast %115 : vector<8x1xf32> to vector<8x128xf32>
    %117 = arith.subf %111, %116 : vector<8x128xf32>
    %118 = arith.mulf %117, %117 : vector<8x128xf32>
    %cst_51 = arith.constant dense<0.000000e+00> : vector<8xf32>
    %119 = vector.multi_reduction <add>, %118, %cst_51 [1] : vector<8x128xf32> to vector<8xf32>
    %120 = vector.shape_cast %119 : vector<8xf32> to vector<8x1xf32>
    %cst_52 = arith.constant 1.280000e+02 : f32
    %121 = vector.broadcast %cst_52 : f32 to vector<8x1xf32>
    %122 = arith.divf %120, %121 : vector<8x1xf32>
    %c0_53 = arith.constant 0 : index
    %c0_54 = arith.constant 0 : index
    %123 = vector.load %arg8[%c0_53, %c0_54] : memref<8x1xf32, #tpu.memory_space<vmem>>, vector<8x1xf32>
    %124 = vector.broadcast %123 : vector<8x1xf32> to vector<8x128xf32>
    %125 = arith.mulf %124, %117 : vector<8x128xf32>
    %cst_55 = arith.constant 9.99999974E-6 : f32
    %126 = vector.broadcast %cst_55 : f32 to vector<8x1xf32>
    %127 = arith.addf %122, %126 : vector<8x1xf32>
    %128 = math.rsqrt %127 : vector<8x1xf32>
    %129 = vector.broadcast %128 : vector<8x1xf32> to vector<8x128xf32>
    %130 = arith.mulf %125, %129 : vector<8x128xf32>
    %c0_56 = arith.constant 0 : index
    %c0_57 = arith.constant 0 : index
    %131 = vector.load %arg9[%c0_56, %c0_57] : memref<8x1xf32, #tpu.memory_space<vmem>>, vector<8x1xf32>
    %132 = vector.broadcast %131 : vector<8x1xf32> to vector<8x128xf32>
    %133 = arith.addf %130, %132 : vector<8x128xf32>
    %cst_58 = arith.constant 0.000000e+00 : f32
    %134 = vector.broadcast %cst_58 : f32 to vector<8x128xf32>
    %135 = arith.maximumf %133, %134 : vector<8x128xf32>
    %c0_59 = arith.constant 0 : index
    %c0_60 = arith.constant 0 : index
    %136 = vector.load %arg10[%c0_59, %c0_60] : memref<8x128xf32, #tpu.memory_space<vmem>>, vector<8x128xf32>
    tpu.vector_store %arg10[%c0_59, %c0_60], %135 {strides = array<i32>} : memref<8x128xf32, #tpu.memory_space<vmem>>, vector<8x128xf32>,
    return
  }
}

</mosaic_0001>

<bundles_post_ra>
// kernel: tpu_custom_call.1
= control target key start
LH: loop header
LB: loop body
LE: loop exit
PB: predicated region body
PF: predicated region fallthrough
CT: control target
= control target key end

     0   :  { %vm56_vm0 = vcmask 1043456   ;;  %v547_v1 = vmov 0.0   ;;  %vm52_vm1 = vcmask 31744   ;;  %s662_s0 = inlined_call_operand.vmem [shape: f32[4,128], index: 0, kind: input, shape index: {}]   ;;  %s663_s1 = inlined_call_operand.vmem [shape: f32[2,8,4], index: 1, kind: input, shape index: {}]   ;;  %s664_s2 = inlined_call_operand.vmem [shape: f32[8,1], index: 2, kind: input, shape index: {}]   ;;  %s665_s3 = inlined_call_operand.vmem [shape: f32[8,128], index: 3, kind: input, shape index: {}]   ;;  %s666_s4 = inlined_call_operand.vmem [shape: f32[8,24], index: 4, kind: input, shape index: {}]   ;;  %s667_s5 = inlined_call_operand.vmem [shape: f32[8,1], index: 5, kind: input, shape index: {}]   ;;  %s668_s6 = inlined_call_operand.vmem [shape: f32[8,24], index: 6, kind: input, shape index: {}]   ;;  %s669_s7 = inlined_call_operand.vmem [shape: f32[8,1], index: 7, kind: input, shape index: {}]   ;;  %s670_s8 = inlined_call_operand.vmem [shape: f32[8,1], index: 8, kind: input, shape index: {}]   ;;  %s671_s9 = inlined_call_operand.vmem [shape: f32[8,1], index: 9, kind: input, shape index: {}]   ;;  %s672_s10 = inlined_call_operand.hbm [shape: f32[8,128], index: 10, kind: output, shape index: {}]  }
   0x1   :  { %v50_v0 = vld [vmem:[%s662_s0] sm:$0xf]  ;;  %487 = vmatprep.subr.mxu0 %v547_v1  ;;  %492 = vmatprep.subr.mxu1 %v547_v1  ;;  %v466_v3 = vld [vmem:[%s663_s1 + $0x8] sm:$0xff] }
   0x2   :  { %v51_v2 = vld [vmem:[%s663_s1] sm:$0xff] }
   0x3   :  { %15 = vsyncpa [#allocation3], 0  ;;  %488 = vmatpush3.msk.msra.mxu0 %vm56_vm0, %v50_v0  ;;  %vm548_vm2 = vmmov 0   ;;  %493 = vmatpush3.msk.msra.mxu1 %vm56_vm0, %v50_v0  ;;  %v215_v4 = vld [vmem:[%s664_s2] sm:$0xff]  ;;  %v549_v5 = vmov 0   ;;  %v36_v6 = vlaneseq  ;;  %s550_s20 = smov 1  }
   0x4   :  { %489 = vmatprep.mubr.msk.f32.mxu0 %vm548_vm2, %v547_v1  ;;  %494 = vmatprep.mubr.msk.f32.mxu1 %vm548_vm2, %v547_v1  ;;  %v222_v17 = vld [vmem:[%s665_s3] sm:$0xff]  ;;  %s551_s21 = smov 127   ;;  %vm261_vm7 = vcmask 195584  }
   0x5   :  { %490 = vmatmul.mubr.msk.f32.vlgmr.msra.gmra.mxu0 %vm52_vm1, %v51_v2  ;;  %495 = vmatmul.mubr.msk.f32.vlgmr.msra.gmra.mxu1 %vm52_vm1, %v466_v3  ;;  %v37_v7 = vand.u32 127, %v36_v6  ;;  %v255_v20 = vld [vmem:[%s667_s5] sm:$0xff] }
   0x6   :  { %521 = vset.pattern.permute.xlu0 %v549_v5  ;;  %497 = vmatprep.subr.mxu0 %v547_v1  ;;  %v254_v25 = vld [vmem:[%s666_s4] sm:$0xff] }
   0x7   :  { %218 = vperm.xlu0 %521, %v215_v4   ;;  %503 = vmatprep.mubr.msk.f32.mxu0 %vm548_vm2, %v547_v1  ;;  %v42_v8 = vand.u32 1, %v37_v7  ;;  %v228_v21 = vand.u32 31, %v37_v7  ;;  %v343_v32 = vld [vmem:[%s669_s7] sm:$0xff] }
   0x8   :  { %522 = vset.pattern.permute.xlu1 %v549_v5  ;;  %506 = vmatprep.subr.mxu1 %v547_v1  ;;  %v342_v34 = vld [vmem:[%s668_s6] sm:$0xff] }
   0x9   :  { %512 = vmatprep.mubr.msk.f32.mxu1 %vm548_vm2, %v547_v1  ;;  %vm130_vm3 = vcmp.eq.s32.totalorder %v42_v8, 0  ;;  %vm210_vm4 = vcmp.eq.s32.totalorder %v42_v8, 1  ;;  %v240_v22 = vadd.s32 1, %v228_v21  ;;  %v236_v23 = vadd.s32 4294967295, %v228_v21  ;;  %v441_v40 = vld [vmem:[%s671_s9] sm:$0xff]  ;;  %s552_s9 = smov [#allocation2]  }
   0xa   :  { %v431_v45 = vld [vmem:[%s670_s8] sm:$0xff]  ;;  %s456_s29 = sshll.u32 %s552_s9, 4  ;;  %s457_s29 = int_to_ptr.vmem [resolvable:$true] %s456_s29 }
   0xb   :  { %vm242_vm5 = vcmp.lt.s32.totalorder %v240_v22, 32  ;;  %vm237_vm6 = vcmp.ge.s32.totalorder %v236_v23, 0  ;;  %s525_s30 = scalar_lea.vmem %s457_s29, 128  ;;  %p530_p1 = scmp.lt.s32.totalorder %s457_s29, %s457_s29 }
   0xc   :  { %p526_p0 = scmp.ne.s32.totalorder %s457_s29, %s525_s30  ;;  %p531_p2 = scmp.lt.s32.totalorder %s525_s30, %s525_s30 }
   0xe   :  { %p532_p3 = por %p531_p2, %p530_p1 }
  0x10   :  { %p533_p4 = pnand %p532_p3, %p526_p0 }
  0x82   :  { %v219_v13 = vpop.permute.xlu0 %218 }
  0xc5   :  { %v126_v9 = vpop.f32.mrf.mxu0  ;;  %v206_v10 = vpop.f32.mrf.mxu1 }
  0xc6   :  { %v133_v11 = vsel %vm130_vm3, %v126_v9, 0.0  ;;  %v213_v12 = vsel %vm210_vm4, %v206_v10, 0.0 }
  0xc7   :  { %v214_v14 = vadd.f32 %v213_v12, %v133_v11  ;;  %v491_v15 = vpop.f32.mrf.mxu0  ;;  %v496_v16 = vpop.f32.mrf.mxu1 }
  0xc9   :  { %v221_v18 = vadd.f32 %v219_v13, %v214_v14 }
  0xcb   :  { %v223_v19 = vadd.f32 %v222_v17, %v221_v18 }
  0xcd   :  { %244 = vrot.lane.b32.xlu1 %v223_v19, %s550_s20  ;;  %249 = vrot.lane.b32.xlu0 %v223_v19, %s551_s21 }
  0xd1   :  { %258 = vperm.xlu1 %522, %v255_v20  }
 0x13f   :  { %v250_v24 = vpop.permute.xlu0 %249  ;;  %v245_v26 = vpop.permute.xlu1 %244 }
 0x140   :  { %498 = vmatpush3.msk.msra.mxu0 %vm242_vm5, %v250_v24 }
 0x141   :  { %499 = vmatprep.subr.mxu0 %v547_v1 }
 0x142   :  { %500 = vmatpush3.msra.mxu0 %v223_v19 }
 0x143   :  { %501 = vmatprep.subr.mxu0 %v547_v1 }
 0x144   :  { %502 = vmatpush3.msk.msra.mxu0 %vm237_vm6, %v245_v26 }
 0x145   :  { %504 = vmatmul.mubr.msk.f32.vlgmr.msra.gmra.mxu0 %vm261_vm7, %v254_v25 }
 0x14c   :  { %v259_v27 = vpop.permute.xlu1 %258 }
 0x205   :  { %v331_v28 = vpop.f32.mrf.mxu0 }
 0x206   :  { %v332_v29 = vadd.f32 %v331_v28, %v259_v27 }
 0x207   :  { %v505_v30 = vpop.f32.mrf.mxu0 }
 0x208   :  { %v335_v31 = vmax.f32 %v332_v29, 0.0 }
 0x20a   :  { %336 = vrot.lane.b32.xlu1 %v335_v31, %s550_s20  ;;  %339 = vrot.lane.b32.xlu0 %v335_v31, %s551_s21 }
 0x20e   :  { %346 = vperm.xlu0 %521, %v343_v32  }
 0x27c   :  { %v340_v33 = vpop.permute.xlu0 %339  ;;  %v337_v35 = vpop.permute.xlu1 %336 }
 0x27d   :  { %507 = vmatpush3.msk.msra.mxu1 %vm242_vm5, %v340_v33 }
 0x27e   :  { %508 = vmatprep.subr.mxu1 %v547_v1 }
 0x27f   :  { %509 = vmatpush3.msra.mxu1 %v335_v31 }
 0x280   :  { %510 = vmatprep.subr.mxu1 %v547_v1 }
 0x281   :  { %511 = vmatpush3.msk.msra.mxu1 %vm237_vm6, %v337_v35 }
 0x282   :  { %513 = vmatmul.mubr.msk.f32.vlgmr.msra.gmra.mxu1 %vm261_vm7, %v342_v34 }
 0x289   :  { %v347_v36 = vpop.permute.xlu0 %346 }
 0x342   :  { %v418_v37 = vpop.f32.mrf.mxu1 }
 0x343   :  { %v419_v38 = vadd.f32 %v418_v37, %v347_v36 }
 0x344   :  { %v514_v39 = vpop.f32.mrf.mxu1 }
 0x345   :  { %422 = vadd.xlane.f32.xlu1 %v419_v38 }
 0x356   :  { %444 = vperm.xlu1 %522, %v441_v40  }
 0x3ce   :  { %v423_v41 = vpop.xlane.xlu1 %422 }
 0x3cf   :  { %v425_v42 = vmul.f32 0.0078125, %v423_v41 }
 0x3d1   :  { %v426_v43 = vsub.f32 %v419_v38, %v425_v42 }
 0x3d2   :  { %v445_v53 = vpop.permute.xlu1 %444 }
 0x3d3   :  { %v427_v44 = vmul.f32 %v426_v43, %v426_v43 }
 0x3d5   :  { %428 = vadd.xlane.f32.xlu0 %v427_v44 }
 0x3eb   :  { %434 = vperm.xlu0 %521, %v431_v45  }
 0x45e   :  { %v429_v46 = vpop.xlane.xlu0 %428 }
 0x45f   :  { %v430_v47 = vmul.f32 0.0078125, %v429_v46 }
 0x461   :  { %v438_v48 = vadd.f32 1e-05, %v430_v47 }
 0x463   :  { %523 = vrsqrt.f32 %v438_v48 }
 0x466   :  { %v435_v49 = vpop.permute.xlu0 %434 }
 0x467   :  { %v437_v50 = vmul.f32 %v435_v49, %v426_v43 }
 0x470   :  { %v524_v51 = vpop.eup %523 }
 0x471   :  { %v440_v52 = vmul.f32 %v524_v51, %v437_v50 }
 0x473   :  { %v447_v54 = vadd.f32 %v445_v53, %v440_v52 }
 0x475   :  { %v448_v55 = vmax.f32 %v447_v54, 0.0 }
 0x477   :  { %449 = vst [vmem:[#allocation2] sm:$0xff] %v448_v55 }
 0x478   :  { %536 = shalt.err (!%p533_p4)
}
 0x479   :  { %459 = dma.vmem_to_hbm [thread:$0]  %s457_s29, 128, %s672_s10, [#allocation3]  }
 0x47a   :  { %545 = dma.done.wait [#allocation3], 128  }
 0x47b   :  { %546 = vsyncadd [#allocation3], 4294967168 }
 0x47c   :  { %463 = vsyncpa [#allocation3], 1 }

</bundles_post_ra>
